<compile_context>
chip_gen: v5e
topology: v5e:2x2
jax: 0.10.0
libtpu: 0.0.40
codegen_flags: <defaults>
</compile_context>

<pallas_src>
import functools
from typing import NamedTuple

import jax
import jax.numpy as jnp
from jax import lax
from jax.experimental import pallas as pl
from jax.experimental.pallas import tpu as pltpu

ZERO_THRESHOLD = 1e-6       # hyperparameters['zero threshold']
DILUTION_THRESHOLD = 0.3    # hyperparameters['dilution threshold']

_MIB = 1 << 20


def _round_up(x, m):
    return (x + m - 1) // m * m


# --------------------------------------------------------------------------- #
# Kernel A: exact softmax + the four scalar losses (runs once, T x G work).
# --------------------------------------------------------------------------- #
def _loss_kernel(fit_ref, fq_ref, fqm_bf16_ref, losses_ref, *, num_positions):
    fq = fq_ref[...]                     # (T, G) f32
    fit = fit_ref[...]                   # (1, G) f32
    n_t, n_gt = fq.shape

    # Exact, numerically stable softmax over genotypes. This block runs once per
    # call, so exact divides (no approx reciprocal) keep the ZERO/DILUTION
    # threshold comparisons identical to the f32 reference.
    mx = jnp.max(fq, axis=1, keepdims=True)                  # (T, 1)
    ex = jnp.exp(fq - mx)                                    # (T, G)
    sum_ex = jnp.sum(ex, axis=1, keepdims=True)              # (T, 1)
    fqm = ex / sum_ex                                        # (T, G)
    log_fqm = (fq - mx) - jnp.log(sum_ex)                    # exact log-softmax

    # Pre-scale by 1/num_positions and cast once: the streaming matmul kernel then
    # needs no per-tile multiply.
    fqm_bf16_ref[...] = (fqm * (1.0 / num_positions)).astype(jnp.bfloat16)

    fe = jnp.exp(fit)                                        # (1, G)

    # ---- fitness KL loss (log-domain rewrite, roll instead of [1:] slices) ----
    shift = n_t - 1                                          # row t -> fqm[t+1]
    p1 = pltpu.roll(fqm, shift, 0)
    dlog = pltpu.roll(log_fqm, shift, 0) - log_fqm           # log p1 - log p0
    lane_mask = (fqm >= ZERO_THRESHOLD).astype(jnp.float32)  # p0-based mask
    p1m = p1 * lane_mask

    s1 = jnp.sum(p1m, axis=1, keepdims=True)                          # (T,1) weight
    mean_pop = jnp.sum(fqm * lane_mask * fe, axis=1, keepdims=True)   # (T,1)

    np1 = p1m / s1                                           # exact tiny divide
    # kl_elem = np1 * (log(np1) - log(p0*fe/mean_pop)); only per-row scalar logs.
    diff = dlog - jnp.log(s1) - fit + jnp.log(mean_pop)      # (T, G), finite
    kl = jnp.sum(np1 * diff, axis=1, keepdims=True)          # (T, 1)

    # TODO(synk): the torch `loss > 100` interactive-debug branch (code.interact)
    # is host-side control flow with no kernel equivalent; intentionally omitted.
    row = lax.broadcasted_iota(jnp.int32, (n_t, 1), 0)
    # Keep this a select (not a multiply): rows with s1 == 0 carry NaN in kl.
    valid = (row < n_t - 1) & (s1 >= DILUTION_THRESHOLD)
    fit_loss = jnp.sum(jnp.where(valid, s1 * kl, 0.0),
                       axis=0, keepdims=True) * (1.0 / (n_t - 1))

    # ---- frequency sparsity (negative skewness) loss ---------------------------
    m = jnp.sum(fqm, axis=1, keepdims=True) * (1.0 / n_gt)   # row mean
    dev = fqm - m
    dev2 = dev * dev
    var = jnp.sum(dev2, axis=1, keepdims=True) * (1.0 / (n_gt - 1))   # torch std()
    cube = jnp.sum(dev2 * (-dev), axis=1, keepdims=True) * (1.0 / n_gt)
    inv_s = lax.rsqrt(var)
    skew_t = cube * inv_s * inv_s * inv_s
    sparsity = jnp.sum(skew_t, axis=0, keepdims=True) * (1.0 / n_t)

    # ---- L1 + skew of exp(fitness) ----------------------------------------------
    l1 = jnp.sum(fe, axis=1, keepdims=True)                  # (1, 1)
    fm = l1 * (1.0 / n_gt)
    fdev = fe - fm
    fdev2 = fdev * fdev
    fvar = jnp.sum(fdev2, axis=1, keepdims=True) * (1.0 / (n_gt - 1))
    fcube = jnp.sum(fdev2 * (-fdev), axis=1, keepdims=True) * (1.0 / n_gt)
    inv_fs = lax.rsqrt(fvar)
    fskew = fcube * inv_fs * inv_fs * inv_fs

    # pack the four scalars into one lane-dense (1, 128) unmasked store
    lane = lax.broadcasted_iota(jnp.int32, (1, 128), 1)
    losses_ref[...] = (jnp.where(lane == 0, fit_loss, 0.0)
                       + jnp.where(lane == 1, sparsity, 0.0)
                       + jnp.where(lane == 2, l1, 0.0)
                       + jnp.where(lane == 3, fskew, 0.0))


# --------------------------------------------------------------------------- #
# Kernel B: streaming predicted log-marginals; P axis is a parallel grid axis.
# --------------------------------------------------------------------------- #
def _marginals_kernel(fqm_ref, g_ref, logpm_ref):
    g = g_ref[...].astype(jnp.bfloat16)              # binary int8 -> bf16, exact
    pm = jnp.dot(fqm_ref[...], g,
                 preferred_element_type=jnp.float32)  # (T, TP), f32 accumulate
    # 1/num_positions already folded into fqm_ref by the loss kernel.
    logpm_ref[...] = jnp.log(pm + 1e-10)


# --------------------------------------------------------------------------- #
# Tile selection + cached genotype preparation.
# --------------------------------------------------------------------------- #
def _select_tile_p(n_t, n_gt, p_dim, *, vmem_budget_bytes=32 * _MIB,
                   max_tile_p=16384):
    """Pick the P lane-tile from a VMEM byte budget (not a fixed 512)."""
    p128 = _round_up(p_dim, 128)
    # per-lane-column VMEM cost of the streaming kernel:
    #   int8 genotype tile (double buffered) : 2 * n_gt
    #   in-kernel bf16 cast of the tile      : 2 * n_gt
    #   f32 output tile (double buffered)    : 2 * 4 * n_t
    per_lane = 2 * n_gt + 2 * n_gt + 8 * n_t
    resident = 2 * (n_t * n_gt * 2)                  # resident bf16 softmax input
    tp = (vmem_budget_bytes - resident) // per_lane
    tp = max(128, min(max_tile_p, (tp // 128) * 128))
    tp = min(tp, p128)
    p_pad = _round_up(p128, tp)                      # pad P to a multiple of tp
    vmem_est = resident + per_lane * tp
    # Explicit scoped-VMEM limit; with the default budget this stays <= ~40 MiB,
    # safe on v7x's 64 MiB physical VMEM while keeping double-buffering intact.
    vmem_limit = int(max(32 * _MIB, vmem_est + 8 * _MIB))
    return tp, p_pad, vmem_limit


class PreparedGenotypes(NamedTuple):
    """Genotype matrix converted/padded once; cache and reuse across calls."""
    data: jax.Array          # (n_gt, p_pad) int8, lane-padded to a multiple of tile_p
    p_dim: int
    tile_p: int
    vmem_limit_bytes: int


def prepare_genotypes(genotypes_tensor, num_timepoints, *,
                      vmem_budget_bytes=32 * _MIB, max_tile_p=16384):
    n_gt, p_dim = genotypes_tensor.shape
    tp, p_pad, vmem_limit = _select_tile_p(
        num_timepoints, n_gt, p_dim,
        vmem_budget_bytes=vmem_budget_bytes, max_tile_p=max_tile_p)
    g = jnp.asarray(genotypes_tensor).astype(jnp.int8)   # binary one-hot -> exact
    if p_pad != p_dim:
        g = jnp.pad(g, ((0, 0), (0, p_pad - p_dim)))
    return PreparedGenotypes(g, p_dim, tp, vmem_limit)


def marginal_fitness_forward(fitness, fq_mat, genotypes, num_positions):
    """Pallas implementation of MarginalFitnessModel.forward().

    `genotypes` may be the raw (n_gt, n_pos*len_alphabet) binary matrix or a
    PreparedGenotypes (preferred: prepare once, reuse across calls).

    Returns (log_pred_marginals (T, P), fitness_loss (1,), fq_sparsity_loss (1,),
             l1_fitness_loss (1,), skew_fitness_loss (1,)).
    """
    n_t, n_gt = fq_mat.shape
    assert n_t >= 2, "MarginalFitnessModel requires at least 2 timepoints"

    if not isinstance(genotypes, PreparedGenotypes):
        genotypes = prepare_genotypes(genotypes, n_t)
    g, p_dim, tp, vmem_limit = genotypes
    p_pad = g.shape[1]
    assert g.shape[0] == n_gt and p_pad % tp == 0

    fit2 = jnp.asarray(fitness, jnp.float32).reshape(1, n_gt)
    fq = jnp.asarray(fq_mat, jnp.float32)

    # ---- pass 1: softmax + scalar losses (tiny, gridless, whole arrays in VMEM) ----
    fqm_bf16, losses = pl.pallas_call(
        functools.partial(_loss_kernel, num_positions=num_positions),
        out_shape=(jax.ShapeDtypeStruct((n_t, n_gt), jnp.bfloat16),
                   jax.ShapeDtypeStruct((1, 128), jnp.float32)),
    )(fit2, fq)

    # ---- pass 2: stream the int8 genotype matrix over a parallel P grid ----------
    grid = (p_pad // tp,)
    log_pm_pad = pl.pallas_call(
        _marginals_kernel,
        out_shape=jax.ShapeDtypeStruct((n_t, p_pad), jnp.float32),
        grid_spec=pltpu.PrefetchScalarGridSpec(
            num_scalar_prefetch=0,
            grid=grid,
            in_specs=[
                pl.BlockSpec((n_t, n_gt), lambda i: (0, 0)),   # softmax (resident)
                pl.BlockSpec((n_gt, tp), lambda i: (0, i)),    # int8 genotype tile
            ],
            out_specs=pl.BlockSpec((n_t, tp), lambda i: (0, i)),
        ),
        compiler_params=pltpu.CompilerParams(
            # No resident scratch/accumulator lives on the P axis any more, so it is
            # a true "parallel" axis (uses both TensorCores on v7x).
            dimension_semantics=("parallel",),
            vmem_limit_bytes=vmem_limit),
    )(fqm_bf16, g)

    log_pm = log_pm_pad[:, :p_dim]
    fl = losses[0, 0].reshape(1)
    sp = losses[0, 1].reshape(1)
    l1 = losses[0, 2].reshape(1)
    sk = losses[0, 3].reshape(1)
    return log_pm, fl, sp, l1, sk


def _reference_forward(fitness, fq_mat, genotypes_tensor, num_positions):
    """Pure-JAX f32 reference mirroring the PyTorch forward (for validation)."""
    fqm = jax.nn.softmax(fq_mat, axis=1)
    pm = fqm @ genotypes_tensor / num_positions + 1e-10
    log_pm = jnp.log(pm)

    n_t, n_gt = fq_mat.shape
    fe = jnp.exp(fitness)

    fit_loss = 0.0
    for t in range(n_t - 1):
        p0, p1 = fqm[t], fqm[t + 1]
        mask = p0 >= ZERO_THRESHOLD
        w = jnp.sum(jnp.where(mask, p1, 0.0))
        np1 = jnp.where(mask, p1, 0.0) / w
        mean_pop = jnp.sum(jnp.where(mask, p0 * fe, 0.0))
        log_pred = jnp.log(p0 * fe / mean_pop)
        kl = jnp.sum(jnp.where(np1 > 0,
                               np1 * (jnp.log(jnp.where(np1 > 0, np1, 1.0)) - log_pred),
                               0.0))
        fit_loss = fit_loss + jnp.where(w < DILUTION_THRESHOLD, 0.0, w * kl)
    fit_loss = fit_loss / (n_t - 1)

    m = fqm.mean(axis=1, keepdims=True)
    s = jnp.sqrt(jnp.sum((fqm - m) ** 2, axis=1, keepdims=True) / (n_gt - 1))
    sparsity = jnp.mean(((m - fqm) / s) ** 3, axis=1).sum() / n_t

    l1 = fe.sum()
    fm = fe.mean()
    fs = jnp.sqrt(jnp.sum((fe - fm) ** 2) / (n_gt - 1))
    skew = jnp.mean(((fm - fe) / fs) ** 3)
    return log_pm, fit_loss, sparsity, l1, skew


if __name__ == "__main__":
    # Small synthetic problem consistent with the module's __init__.
    num_genotypes = 128
    num_timepoints = 8
    num_positions = 16
    len_alphabet = 4
    p_dim = num_positions * len_alphabet

    key = jax.random.PRNGKey(0)
    k_fit, k_fq, k_geno = jax.random.split(key, 3)

    # fitness = -1 + 0.01 * randn ; fq_mat = randn
    fitness = (-1.0 + 0.01 * jax.random.normal(k_fit, (num_genotypes,))).astype(jnp.float32)
    fq_mat = jax.random.normal(k_fq, (num_timepoints, num_genotypes)).astype(jnp.float32)

    # Binary one-hot-per-position genotype encoding: (n_gt, n_pos * len_alphabet)
    letters = jax.random.randint(k_geno, (num_genotypes, num_positions), 0, len_alphabet)
    genotypes_tensor = jax.nn.one_hot(letters, len_alphabet, dtype=jnp.float32)
    genotypes_tensor = genotypes_tensor.reshape(num_genotypes, p_dim)

    # Prepare (int8 cast + lane padding) ONCE and reuse across forward calls.
    prepared = prepare_genotypes(genotypes_tensor, num_timepoints)
    prepared = jax.tree_util.tree_map(
        lambda x: jax.block_until_ready(x) if isinstance(x, jax.Array) else x, prepared)

    outs = marginal_fitness_forward(fitness, fq_mat, prepared, num_positions)
    outs = jax.block_until_ready(outs)

    ref = _reference_forward(fitness, fq_mat, genotypes_tensor, num_positions)

    import numpy as np
    # log marginals go through the bf16 MXU path -> slightly looser tolerance
    np.testing.assert_allclose(np.asarray(outs[0]), np.asarray(ref[0]),
                               rtol=1e-2, atol=5e-3)
    for got, want in zip(outs[1:], ref[1:]):
        np.testing.assert_allclose(np.asarray(got),
                                   np.asarray(want).reshape(1),
                                   rtol=5e-3, atol=2e-3)

    print("KERNEL_OK")
</pallas_src>

<mosaic_0001>
module attributes {stable_mosaic.version = 11 : i64} {
  func.func @_loss_kernel(%arg0: memref<1x128xf32, #tpu.memory_space<vmem>>, %arg1: memref<8x128xf32, #tpu.memory_space<vmem>>, %arg2: memref<8x128xbf16, #tpu.memory_space<vmem>>, %arg3: memref<1x128xf32, #tpu.memory_space<vmem>>) attributes {dimension_semantics = [], scalar_prefetch = 0 : i64, scratch_operands = 0 : i64, tpu.core_type = #tpu.core_type<tc>} {
    %c0 = arith.constant 0 : index
    %c0_0 = arith.constant 0 : index
    %0 = vector.load %arg1[%c0, %c0_0] : memref<8x128xf32, #tpu.memory_space<vmem>>, vector<8x128xf32>
    %c0_1 = arith.constant 0 : index
    %c0_2 = arith.constant 0 : index
    %1 = vector.load %arg0[%c0_1, %c0_2] : memref<1x128xf32, #tpu.memory_space<vmem>>, vector<1x128xf32>
    %cst = arith.constant dense<0xFF800000> : vector<8xf32>
    %2 = vector.multi_reduction <maximumf>, %0, %cst [1] : vector<8x128xf32> to vector<8xf32>
    %3 = vector.shape_cast %2 : vector<8xf32> to vector<8x1xf32>
    %4 = vector.broadcast %3 : vector<8x1xf32> to vector<8x128xf32>
    %5 = arith.subf %0, %4 : vector<8x128xf32>
    %6 = math.exp %5 : vector<8x128xf32>
    %cst_3 = arith.constant dense<0.000000e+00> : vector<8xf32>
    %7 = vector.multi_reduction <add>, %6, %cst_3 [1] : vector<8x128xf32> to vector<8xf32>
    %8 = vector.shape_cast %7 : vector<8xf32> to vector<8x1xf32>
    %9 = vector.broadcast %8 : vector<8x1xf32> to vector<8x128xf32>
    %10 = arith.divf %6, %9 : vector<8x128xf32>
    %11 = vector.broadcast %3 : vector<8x1xf32> to vector<8x128xf32>
    %12 = arith.subf %0, %11 : vector<8x128xf32>
    %13 = math.log %8 : vector<8x1xf32>
    %14 = vector.broadcast %13 : vector<8x1xf32> to vector<8x128xf32>
    %15 = arith.subf %12, %14 : vector<8x128xf32>
    %cst_4 = arith.constant 6.250000e-02 : f32
    %16 = vector.broadcast %cst_4 : f32 to vector<8x128xf32>
    %17 = arith.mulf %10, %16 : vector<8x128xf32>
    %18 = arith.truncf %17 : vector<8x128xf32> to vector<8x128xbf16>
    %c0_5 = arith.constant 0 : index
    %c0_6 = arith.constant 0 : index
    %19 = vector.load %arg2[%c0_5, %c0_6] : memref<8x128xbf16, #tpu.memory_space<vmem>>, vector<8x128xbf16>
    tpu.vector_store %arg2[%c0_5, %c0_6], %18 {strides = array<i32>} : memref<8x128xbf16, #tpu.memory_space<vmem>>, vector<8x128xbf16>,
    %20 = math.exp %1 : vector<1x128xf32>
    %c7_i32 = arith.constant 7 : i32
    %21 = tpu.dynamic_rotate %10 by %c7_i32 dim 0 : vector<8x128xf32>, i32 -> vector<8x128xf32>
    %c7_i32_7 = arith.constant 7 : i32
    %22 = tpu.dynamic_rotate %15 by %c7_i32_7 dim 0 : vector<8x128xf32>, i32 -> vector<8x128xf32>
    %23 = arith.subf %22, %15 : vector<8x128xf32>
    %cst_8 = arith.constant 9.99999997E-7 : f32
    %24 = vector.broadcast %cst_8 : f32 to vector<8x128xf32>
    %25 = arith.cmpf oge, %10, %24 : vector<8x128xf32>
    %26 = arith.extui %25 : vector<8x128xi1> to vector<8x128xi32>
    %27 = arith.sitofp %26 : vector<8x128xi32> to vector<8x128xf32>
    %28 = arith.mulf %21, %27 : vector<8x128xf32>
    %cst_9 = arith.constant dense<0.000000e+00> : vector<8xf32>
    %29 = vector.multi_reduction <add>, %28, %cst_9 [1] : vector<8x128xf32> to vector<8xf32>
    %30 = vector.shape_cast %29 : vector<8xf32> to vector<8x1xf32>
    %31 = arith.mulf %10, %27 : vector<8x128xf32>
    %32 = vector.broadcast %20 : vector<1x128xf32> to vector<8x128xf32>
    %33 = arith.mulf %31, %32 : vector<8x128xf32>
    %cst_10 = arith.constant dense<0.000000e+00> : vector<8xf32>
    %34 = vector.multi_reduction <add>, %33, %cst_10 [1] : vector<8x128xf32> to vector<8xf32>
    %35 = vector.shape_cast %34 : vector<8xf32> to vector<8x1xf32>
    %36 = vector.broadcast %30 : vector<8x1xf32> to vector<8x128xf32>
    %37 = arith.divf %28, %36 : vector<8x128xf32>
    %38 = math.log %30 : vector<8x1xf32>
    %39 = vector.broadcast %38 : vector<8x1xf32> to vector<8x128xf32>
    %40 = arith.subf %23, %39 : vector<8x128xf32>
    %41 = vector.broadcast %1 : vector<1x128xf32> to vector<8x128xf32>
    %42 = arith.subf %40, %41 : vector<8x128xf32>
    %43 = math.log %35 : vector<8x1xf32>
    %44 = vector.broadcast %43 : vector<8x1xf32> to vector<8x128xf32>
    %45 = arith.addf %42, %44 : vector<8x128xf32>
    %46 = arith.mulf %37, %45 : vector<8x128xf32>
    %cst_11 = arith.constant dense<0.000000e+00> : vector<8xf32>
    %47 = vector.multi_reduction <add>, %46, %cst_11 [1] : vector<8x128xf32> to vector<8xf32>
    %48 = vector.shape_cast %47 : vector<8xf32> to vector<8x1xf32>
    %49 = tpu.iota {dimensions = array<i32: 0>} : vector<8x1xi32>
    %c7_i32_12 = arith.constant 7 : i32
    %50 = vector.broadcast %c7_i32_12 : i32 to vector<8x1xi32>
    %51 = arith.cmpi slt, %49, %50 : vector<8x1xi32>
    %cst_13 = arith.constant 3.000000e-01 : f32
    %52 = vector.broadcast %cst_13 : f32 to vector<8x1xf32>
    %53 = arith.cmpf oge, %30, %52 : vector<8x1xf32>
    %54 = arith.andi %51, %53 : vector<8x1xi1>
    %55 = arith.mulf %30, %48 : vector<8x1xf32>
    %cst_14 = arith.constant 0.000000e+00 : f32
    %56 = vector.broadcast %cst_14 : f32 to vector<8x1xf32>
    %57 = arith.select %54, %55, %56 : vector<8x1xi1>, vector<8x1xf32>
    %cst_15 = arith.constant dense<0.000000e+00> : vector<1xf32>
    %58 = vector.multi_reduction <add>, %57, %cst_15 [0] : vector<8x1xf32> to vector<1xf32>
    %59 = vector.shape_cast %58 : vector<1xf32> to vector<1x1xf32>
    %cst_16 = arith.constant 0.142857149 : f32
    %60 = vector.broadcast %cst_16 : f32 to vector<1x1xf32>
    %61 = arith.mulf %59, %60 : vector<1x1xf32>
    %cst_17 = arith.constant dense<0.000000e+00> : vector<8xf32>
    %62 = vector.multi_reduction <add>, %10, %cst_17 [1] : vector<8x128xf32> to vector<8xf32>
    %63 = vector.shape_cast %62 : vector<8xf32> to vector<8x1xf32>
    %cst_18 = arith.constant 7.812500e-03 : f32
    %64 = vector.broadcast %cst_18 : f32 to vector<8x1xf32>
    %65 = arith.mulf %63, %64 : vector<8x1xf32>
    %66 = vector.broadcast %65 : vector<8x1xf32> to vector<8x128xf32>
    %67 = arith.subf %10, %66 : vector<8x128xf32>
    %68 = arith.mulf %67, %67 : vector<8x128xf32>
    %cst_19 = arith.constant dense<0.000000e+00> : vector<8xf32>
    %69 = vector.multi_reduction <add>, %68, %cst_19 [1] : vector<8x128xf32> to vector<8xf32>
    %70 = vector.shape_cast %69 : vector<8xf32> to vector<8x1xf32>
    %cst_20 = arith.constant 0.00787401571 : f32
    %71 = vector.broadcast %cst_20 : f32 to vector<8x1xf32>
    %72 = arith.mulf %70, %71 : vector<8x1xf32>
    %cst_21 = arith.constant 0.000000e+00 : f32
    %73 = vector.broadcast %cst_21 : f32 to vector<8x128xf32>
    %74 = arith.subf %73, %67 : vector<8x128xf32>
    %75 = arith.mulf %68, %74 : vector<8x128xf32>
    %cst_22 = arith.constant dense<0.000000e+00> : vector<8xf32>
    %76 = vector.multi_reduction <add>, %75, %cst_22 [1] : vector<8x128xf32> to vector<8xf32>
    %77 = vector.shape_cast %76 : vector<8xf32> to vector<8x1xf32>
    %cst_23 = arith.constant 7.812500e-03 : f32
    %78 = vector.broadcast %cst_23 : f32 to vector<8x1xf32>
    %79 = arith.mulf %77, %78 : vector<8x1xf32>
    %80 = math.rsqrt %72 : vector<8x1xf32>
    %81 = arith.mulf %79, %80 : vector<8x1xf32>
    %82 = arith.mulf %81, %80 : vector<8x1xf32>
    %83 = arith.mulf %82, %80 : vector<8x1xf32>
    %cst_24 = arith.constant dense<0.000000e+00> : vector<1xf32>
    %84 = vector.multi_reduction <add>, %83, %cst_24 [0] : vector<8x1xf32> to vector<1xf32>
    %85 = vector.shape_cast %84 : vector<1xf32> to vector<1x1xf32>
    %cst_25 = arith.constant 1.250000e-01 : f32
    %86 = vector.broadcast %cst_25 : f32 to vector<1x1xf32>
    %87 = arith.mulf %85, %86 : vector<1x1xf32>
    %cst_26 = arith.constant dense<0.000000e+00> : vector<1xf32>
    %88 = vector.multi_reduction <add>, %20, %cst_26 [1] : vector<1x128xf32> to vector<1xf32>
    %89 = vector.shape_cast %88 : vector<1xf32> to vector<1x1xf32>
    %cst_27 = arith.constant 7.812500e-03 : f32
    %90 = vector.broadcast %cst_27 : f32 to vector<1x1xf32>
    %91 = arith.mulf %89, %90 : vector<1x1xf32>
    %92 = vector.broadcast %91 : vector<1x1xf32> to vector<1x128xf32>
    %93 = arith.subf %20, %92 : vector<1x128xf32>
    %94 = arith.mulf %93, %93 : vector<1x128xf32>
    %cst_28 = arith.constant dense<0.000000e+00> : vector<1xf32>
    %95 = vector.multi_reduction <add>, %94, %cst_28 [1] : vector<1x128xf32> to vector<1xf32>
    %96 = vector.shape_cast %95 : vector<1xf32> to vector<1x1xf32>
    %cst_29 = arith.constant 0.00787401571 : f32
    %97 = vector.broadcast %cst_29 : f32 to vector<1x1xf32>
    %98 = arith.mulf %96, %97 : vector<1x1xf32>
    %cst_30 = arith.constant 0.000000e+00 : f32
    %99 = vector.broadcast %cst_30 : f32 to vector<1x128xf32>
    %100 = arith.subf %99, %93 : vector<1x128xf32>
    %101 = arith.mulf %94, %100 : vector<1x128xf32>
    %cst_31 = arith.constant dense<0.000000e+00> : vector<1xf32>
    %102 = vector.multi_reduction <add>, %101, %cst_31 [1] : vector<1x128xf32> to vector<1xf32>
    %103 = vector.shape_cast %102 : vector<1xf32> to vector<1x1xf32>
    %cst_32 = arith.constant 7.812500e-03 : f32
    %104 = vector.broadcast %cst_32 : f32 to vector<1x1xf32>
    %105 = arith.mulf %103, %104 : vector<1x1xf32>
    %106 = math.rsqrt %98 : vector<1x1xf32>
    %107 = arith.mulf %105, %106 : vector<1x1xf32>
    %108 = arith.mulf %107, %106 : vector<1x1xf32>
    %109 = arith.mulf %108, %106 : vector<1x1xf32>
    %110 = tpu.iota {dimensions = array<i32: 1>} : vector<1x128xi32>
    %c0_i32 = arith.constant 0 : i32
    %111 = vector.broadcast %c0_i32 : i32 to vector<1x128xi32>
    %112 = arith.cmpi eq, %110, %111 : vector<1x128xi32>
    %cst_33 = arith.constant 0.000000e+00 : f32
    %113 = vector.shape_cast %61 : vector<1x1xf32> to vector<1x1xf32>
    %114 = vector.broadcast %113 : vector<1x1xf32> to vector<1x128xf32>
    %115 = vector.broadcast %cst_33 : f32 to vector<1x128xf32>
    %116 = arith.select %112, %114, %115 : vector<1x128xi1>, vector<1x128xf32>
    %c1_i32 = arith.constant 1 : i32
    %117 = vector.broadcast %c1_i32 : i32 to vector<1x128xi32>
    %118 = arith.cmpi eq, %110, %117 : vector<1x128xi32>
    %cst_34 = arith.constant 0.000000e+00 : f32
    %119 = vector.shape_cast %87 : vector<1x1xf32> to vector<1x1xf32>
    %120 = vector.broadcast %119 : vector<1x1xf32> to vector<1x128xf32>
    %121 = vector.broadcast %cst_34 : f32 to vector<1x128xf32>
    %122 = arith.select %118, %120, %121 : vector<1x128xi1>, vector<1x128xf32>
    %123 = arith.addf %116, %122 : vector<1x128xf32>
    %c2_i32 = arith.constant 2 : i32
    %124 = vector.broadcast %c2_i32 : i32 to vector<1x128xi32>
    %125 = arith.cmpi eq, %110, %124 : vector<1x128xi32>
    %cst_35 = arith.constant 0.000000e+00 : f32
    %126 = vector.shape_cast %89 : vector<1x1xf32> to vector<1x1xf32>
    %127 = vector.broadcast %126 : vector<1x1xf32> to vector<1x128xf32>
    %128 = vector.broadcast %cst_35 : f32 to vector<1x128xf32>
    %129 = arith.select %125, %127, %128 : vector<1x128xi1>, vector<1x128xf32>
    %130 = arith.addf %123, %129 : vector<1x128xf32>
    %c3_i32 = arith.constant 3 : i32
    %131 = vector.broadcast %c3_i32 : i32 to vector<1x128xi32>
    %132 = arith.cmpi eq, %110, %131 : vector<1x128xi32>
    %cst_36 = arith.constant 0.000000e+00 : f32
    %133 = vector.shape_cast %109 : vector<1x1xf32> to vector<1x1xf32>
    %134 = vector.broadcast %133 : vector<1x1xf32> to vector<1x128xf32>
    %135 = vector.broadcast %cst_36 : f32 to vector<1x128xf32>
    %136 = arith.select %132, %134, %135 : vector<1x128xi1>, vector<1x128xf32>
    %137 = arith.addf %130, %136 : vector<1x128xf32>
    %c0_37 = arith.constant 0 : index
    %c0_38 = arith.constant 0 : index
    %138 = vector.load %arg3[%c0_37, %c0_38] : memref<1x128xf32, #tpu.memory_space<vmem>>, vector<1x128xf32>
    tpu.vector_store %arg3[%c0_37, %c0_38], %137 {strides = array<i32>} : memref<1x128xf32, #tpu.memory_space<vmem>>, vector<1x128xf32>,
    return
  }
}

</mosaic_0001>

<bundles_post_ra>
// kernel: tpu_custom_call.1
= control target key start
LH: loop header
LB: loop body
LE: loop exit
PB: predicated region body
PF: predicated region fallthrough
CT: control target
= control target key end

     0   :  { %9 = vsyncpa [#allocation3], 0  ;;  %s427_s0 = inlined_call_operand.hbm [shape: f32[1,128], index: 0, kind: input, shape index: {}]   ;;  %s428_s1 = inlined_call_operand.hbm [shape: f32[8,128], index: 1, kind: input, shape index: {}]   ;;  %s429_s2 = inlined_call_operand.hbm [shape: bf16[8,128], index: 2, kind: output, shape index: {0}]   ;;  %s430_s3 = inlined_call_operand.hbm [shape: f32[1,128], index: 3, kind: output, shape index: {1}]  }
   0x1   :  { %10 = vsyncpa [#allocation6], 0 }
   0x2   :  { %11 = vsyncpa [#allocation4], 0 }
   0x3   :  { %12 = vsyncpa [#allocation9], 0  ;;  %s18_s14 = sshll.u32 %s427_s0, 4  ;;  %s373_s15 = smov [#allocation2]   ;;  %s19_s14 = int_to_ptr.hbm [resolvable:$true] %s18_s14 }
   0x4   :  { %s20_s16 = sshll.u32 %s373_s15, 4  ;;  %s29_s19 = sshll.u32 %s428_s1, 4  ;;  %s21_s16 = int_to_ptr.vmem [resolvable:$true] %s20_s16  ;;  %s30_s19 = int_to_ptr.hbm [resolvable:$true] %s29_s19 }
   0x5   :  { %23 = dma.hbm_to_vmem [thread:$0]  %s19_s14, 16, %s21_s16, [#allocation3]  }
   0x6   :  { %s374_s20 = smov [#allocation5]  }
   0x7   :  { %s31_s21 = sshll.u32 %s374_s20, 4  ;;  %s32_s21 = int_to_ptr.vmem [resolvable:$true] %s31_s21 }
   0x8   :  { %34 = dma.hbm_to_vmem [thread:$0]  %s30_s19, 128, %s32_s21, [#allocation6]  }
   0x9   :  { %365 = dma.done.wait [#allocation3], 16  }
   0xa   :  { %366 = vsyncadd [#allocation3], 4294967280 }
   0xb   :  { %367 = dma.done.wait [#allocation6], 128  }
   0xc   :  { %368 = vsyncadd [#allocation6], 4294967168  ;;  %v43_v0 = vld [vmem:[#allocation5] sm:$0xff]  ;;  %v44_v6 = vld [vmem:[#allocation2] sm:$0x1]  ;;  %v375_v22 = vmov 0.0  }
   0xd   :  { %45 = vmax.xlane.f32.xlu0 %v43_v0  ;;  %v73_v8 = vmul.f32 1.442695, %v44_v6  ;;  %vm166_vm5 = vcmask 1040384   ;;  %v250_v51 = vld [vmem:[#allocation2] ss:$0 sm:$0xff]  ;;  %s217_s22 = sshll.u32 %s429_s2, 4  ;;  %s218_s22 = int_to_ptr.hbm [resolvable:$true] %s217_s22 }
   0xe   :  { %s376_s23 = smov [#allocation7]   ;;  %s377_s2 = smov [#allocation8]  }
   0xf   :  { %s215_s24 = sshll.u32 %s376_s23, 4  ;;  %s226_s25 = sshll.u32 %s377_s2, 4  ;;  %s216_s24 = int_to_ptr.vmem [resolvable:$true] %s215_s24  ;;  %s227_s25 = int_to_ptr.vmem [resolvable:$true] %s226_s25 }
  0x10   :  { %s228_s28 = sshll.u32 %s430_s3, 4  ;;  %s229_s28 = int_to_ptr.hbm [resolvable:$true] %s228_s28 }
  0x80   :  { %v46_v1 = vpop.xlane.xlu0 %45 }
  0x81   :  { %v47_v2 = vsub.f32 %v43_v0, %v46_v1 }
  0x83   :  { %v48_v3 = vmul.f32 1.442695, %v47_v2 }
  0x85   :  { %251 = vpow2.f32 %v48_v3 }
  0x8b   :  { %v252_v4 = vpop.eup %251 }
  0x8c   :  { %50 = vadd.xlane.f32.xlu0 %v252_v4 }
  0xff   :  { %v51_v5 = vpop.xlane.xlu0 %50 }
 0x100   :  { %253 = vrcp.f32 %v51_v5  ;;  %v63_v11 = vand.u32 2147483648, %v51_v5  ;;  %v61_v13 = vand.u32 2147483647, %v51_v5  ;;  %vm57_vm1 = vweird.f32 %v51_v5 }
 0x101   :  { %255 = vpow2.f32 %v73_v8 }
 0x102   :  { %v64_v15 = vor.u32 1.1754944e-38, %v63_v11  ;;  %vm62_vm3 = vcmp.eq.f32.partialorder %v61_v13, 8.507059e+37  ;;  %257 = vlog2.f32 %v51_v5 }
 0x106   :  { %v254_v7 = vpop.eup %253 }
 0x107   :  { %v53_v9 = vmul.f32 %v254_v7, %v51_v5  ;;  %vm58_vm0 = vweird.f32 %v254_v7  ;;  %v256_v17 = vpop.eup %255 }
 0x108   :  { %vm59_vm2 = vmor %vm57_vm1, %vm58_vm0  ;;  %v86_v20 = vperm.slane %v256_v17, 0  ;;  %v167_v29 = vsel %vm166_vm5, %v256_v17, 0.0  ;;  %v258_v32 = vpop.eup %257 }
 0x109   :  { %v54_v10 = vsub.f32 1.0, %v53_v9  ;;  %v68_v36 = vmul.f32 0.6931472, %v258_v32 }
 0x10b   :  { %v55_v12 = vmul.f32 %v254_v7, %v54_v10  ;;  %v69_v40 = vsub.f32 %v47_v2, %v68_v36 }
 0x10d   :  { %v56_v14 = vadd.f32 %v254_v7, %v55_v12  ;;  %v76_v41 = vrot.slane %v69_v40, 1  ;;  %v119_v12 = vlaneseq }
 0x10f   :  { %v60_v16 = vsel %vm59_vm2, %v254_v7, %v56_v14  ;;  %v77_v48 = vsub.f32 %v76_v41, %v69_v40 }
 0x110   :  { %v65_v18 = vsel %vm62_vm3, %v64_v15, %v60_v16 }
 0x111   :  { %v66_v19 = vmul.f32 %v252_v4, %v65_v18 }
 0x113   :  { %133 = vadd.xlane.f32.xlu1 %v66_v19  ;;  %vm78_vm4 = vcmp.ge.f32.partialorder %v66_v19, 1e-06  ;;  %v70_v21 = vmul.f32 0.0625, %v66_v19  ;;  %v75_v25 = vrot.slane %v66_v19, 1 }
 0x114   :  { %v244_v23 = vsel %vm78_vm4, 1.0, %v375_v22 }
 0x115   :  { %v84_v24 = vmul.f32 %v244_v23, %v66_v19  ;;  %v71_v26 = vpack.c.bf16 %v70_v21, %v70_v21  ;;  %v81_v28 = vmul.f32 %v244_v23, %v75_v25 }
 0x117   :  { %v88_v27 = vmul.f32 %v86_v20, %v84_v24  ;;  %72 = vst [vmem:[#allocation7] sm:$0xf] %v71_v26 }
 0x118   :  { %220 = dma.vmem_to_hbm [thread:$0]  %s216_s24, 64, %s218_s22, [#allocation4]  }
 0x119   :  { %89 = vadd.xlane.f32.xlu2 %v88_v27 }
 0x11b   :  { %82 = vadd.xlane.f32.xlu1 %v81_v28 }
 0x121   :  { %168 = vadd.xlane.f32.xlu2 %v167_v29 }
 0x186   :  { %v134_v30 = vpop.xlane.xlu1 %133 }
 0x187   :  { %v135_v31 = vmul.f32 0.0078125, %v134_v30 }
 0x189   :  { %v136_v33 = vsub.f32 %v66_v19, %v135_v31  ;;  %v120_v19 = vshrl.u32 %v119_v12, 7 }
 0x18b   :  { %v137_v34 = vmul.f32 %v136_v33, %v136_v33  ;;  %v141_v35 = vsub.f32 0.0, %v136_v33  ;;  %vm121_vm13 = vcmp.lt.s32.totalorder %v120_v19, 7 }
 0x18c   :  { %v90_v37 = vpop.xlane.xlu2 %89 }
 0x18d   :  { %138 = vadd.xlane.f32.xlu0 %v137_v34  ;;  %v142_v38 = vmul.f32 %v141_v35, %v137_v34 }
 0x18e   :  { %v405_v39 = vpop.xlane.xlu1 %82 }
 0x18f   :  { %259 = vrcp.f32 %v405_v39  ;;  %143 = vadd.xlane.f32.xlu1 %v142_v38  ;;  %v102_v54 = vand.u32 2147483648, %v405_v39  ;;  %v100_v57 = vand.u32 2147483647, %v405_v39  ;;  %vm96_vm7 = vweird.f32 %v405_v39 }
 0x190   :  { %261 = vlog2.f32 %v405_v39  ;;  %vm122_vm14 = vcmp.ge.f32.partialorder %v405_v39, 0.3 }
 0x191   :  { %263 = vlog2.f32 %v90_v37  ;;  %v103_v0 = vor.u32 1.1754944e-38, %v102_v54  ;;  %vm101_vm9 = vcmp.eq.f32.partialorder %v100_v57, 8.507059e+37  ;;  %vm123_vm15 = vmand %vm121_vm13, %vm122_vm14 }
 0x194   :  { %v409_v42 = vpop.xlane.xlu2 %168 }
 0x195   :  { %v260_v43 = vpop.eup %259  ;;  %v170_v44 = vmul.f32 0.0078125, %v409_v42 }
 0x196   :  { %v262_v45 = vpop.eup %261  ;;  %v92_v46 = vmul.f32 %v260_v43, %v405_v39  ;;  %vm97_vm6 = vweird.f32 %v260_v43 }
 0x197   :  { %v171_v47 = vsub.f32 %v256_v17, %v170_v44  ;;  %v107_v49 = vmul.f32 0.6931472, %v262_v45  ;;  %v264_v58 = vpop.eup %263  ;;  %vm98_vm8 = vmor %vm96_vm7, %vm97_vm6 }
 0x198   :  { %v93_v50 = vsub.f32 1.0, %v92_v46  ;;  %v114_v1 = vmul.f32 0.6931472, %v264_v58 }
 0x199   :  { %v172_v52 = vmul.f32 %v171_v47, %v171_v47  ;;  %v177_v53 = vsub.f32 0.0, %v171_v47  ;;  %v108_v55 = vsub.f32 %v77_v48, %v107_v49  ;;  %v197_v48 = vand.u32 127, %v119_v12 }
 0x19a   :  { %v94_v56 = vmul.f32 %v260_v43, %v93_v50 }
 0x19b   :  { %v173_v59 = vsel %vm166_vm5, %v172_v52, 0.0  ;;  %v178_v60 = vmul.f32 %v177_v53, %v172_v52  ;;  %v112_v62 = vsub.f32 %v108_v55, %v250_v51  ;;  %vm198_vm3 = vcmp.eq.s32.totalorder %v197_v48, 0 }
 0x19c   :  { %174 = vadd.xlane.f32.xlu2 %v173_v59  ;;  %v95_v61 = vadd.f32 %v260_v43, %v94_v56  ;;  %vm200_vm4 = vcmp.eq.s32.totalorder %v197_v48, 1  ;;  %vm206_vm6 = vcmp.eq.s32.totalorder %v197_v48, 3 }
 0x19d   :  { %v179_v63 = vsel %vm166_vm5, %v178_v60, 0.0  ;;  %v115_v5 = vadd.f32 %v114_v1, %v112_v62  ;;  %vm203_vm5 = vcmp.eq.s32.totalorder %v197_v48, 2 }
 0x19e   :  { %180 = vadd.xlane.f32.xlu1 %v179_v63  ;;  %v99_v2 = vsel %vm98_vm8, %v260_v43, %v95_v61  ;;  %v204_v59 = vsel %vm203_vm5, %v409_v42, 0.0 }
 0x19f   :  { %v104_v3 = vsel %vm101_vm9, %v103_v0, %v99_v2 }
 0x1a0   :  { %v105_v4 = vmul.f32 %v104_v3, %v81_v28 }
 0x1a2   :  { %v116_v6 = vmul.f32 %v115_v5, %v105_v4 }
 0x1a4   :  { %117 = vadd.xlane.f32.xlu0 %v116_v6 }
 0x200   :  { %v139_v7 = vpop.xlane.xlu0 %138 }
 0x201   :  { %v140_v8 = vmul.f32 0.007874016, %v139_v7 }
 0x202   :  { %v144_v16 = vpop.xlane.xlu1 %143 }
 0x203   :  { %265 = vrsqrt.f32 %v140_v8  ;;  %vm152_vm11 = vweird.f32 %v140_v8  ;;  %v145_v20 = vmul.f32 0.0078125, %v144_v16 }
 0x209   :  { %v266_v9 = vpop.eup %265 }
 0x20a   :  { %v147_v10 = vmul.f32 %v266_v9, %v140_v8  ;;  %vm153_vm10 = vweird.f32 %v266_v9 }
 0x20b   :  { %vm154_vm12 = vmor %vm152_vm11, %vm153_vm10 }
 0x20c   :  { %v148_v11 = vmul.f32 %v266_v9, %v147_v10 }
 0x20e   :  { %v149_v13 = vmul.f32 0.5, %v148_v11 }
 0x20f   :  { %v175_v14 = vpop.xlane.xlu2 %174 }
 0x210   :  { %v150_v15 = vsub.f32 1.5, %v149_v13  ;;  %v176_v17 = vmul.f32 0.007874016, %v175_v14 }
 0x211   :  { %v181_v38 = vpop.xlane.xlu1 %180 }
 0x212   :  { %v151_v18 = vmul.f32 %v266_v9, %v150_v15  ;;  %267 = vrsqrt.f32 %v176_v17  ;;  %vm189_vm1 = vweird.f32 %v176_v17 }
 0x214   :  { %v155_v21 = vsel %vm154_vm12, %v266_v9, %v151_v18 }
 0x215   :  { %v156_v22 = vmul.f32 %v155_v21, %v145_v20 }
 0x217   :  { %v157_v23 = vmul.f32 %v156_v22, %v155_v21  ;;  %v118_v24 = vpop.xlane.xlu0 %117 }
 0x218   :  { %v268_v25 = vpop.eup %267  ;;  %v124_v26 = vmul.f32 %v118_v24, %v405_v39  ;;  %v182_v39 = vmul.f32 0.0078125, %v181_v38 }
 0x219   :  { %v158_v27 = vmul.f32 %v157_v23, %v155_v21  ;;  %v184_v28 = vmul.f32 %v268_v25, %v176_v17  ;;  %vm190_vm0 = vweird.f32 %v268_v25 }
 0x21a   :  { %v125_v29 = vsel %vm123_vm15, %v124_v26, 0.0  ;;  %vm191_vm2 = vmor %vm189_vm1, %vm190_vm0 }
 0x21b   :  { %v159_v30 = vrot.slane %v158_v27, 4  ;;  %v185_v31 = vmul.f32 %v268_v25, %v184_v28  ;;  %v126_v32 = vrot.slane %v125_v29, 4 }
 0x21d   :  { %v160_v33 = vadd.f32 %v159_v30, %v158_v27  ;;  %v186_v34 = vmul.f32 0.5, %v185_v31  ;;  %v127_v35 = vadd.f32 %v126_v32, %v125_v29 }
 0x21f   :  { %v161_v36 = vrot.slane %v160_v33, 2  ;;  %v187_v37 = vsub.f32 1.5, %v186_v34  ;;  %v128_v40 = vrot.slane %v127_v35, 2 }
 0x221   :  { %v162_v41 = vadd.f32 %v161_v36, %v160_v33  ;;  %v188_v43 = vmul.f32 %v268_v25, %v187_v37  ;;  %v129_v44 = vadd.f32 %v128_v40, %v127_v35 }
 0x223   :  { %v163_v45 = vrot.slane %v162_v41, 1  ;;  %v192_v46 = vsel %vm191_vm2, %v268_v25, %v188_v43  ;;  %v130_v47 = vrot.slane %v129_v44, 1 }
 0x224   :  { %v193_v49 = vmul.f32 %v192_v46, %v182_v39 }
 0x225   :  { %v164_v50 = vadd.f32 %v163_v45, %v162_v41  ;;  %v131_v51 = vadd.f32 %v130_v47, %v129_v44 }
 0x226   :  { %v194_v52 = vmul.f32 %v193_v49, %v192_v46 }
 0x227   :  { %v132_v53 = vmul.f32 0.14285715, %v131_v51  ;;  %v165_v54 = vmul.f32 0.125, %v164_v50 }
 0x228   :  { %v195_v55 = vmul.f32 %v194_v52, %v192_v46 }
 0x229   :  { %v199_v56 = vsel %vm198_vm3, %v132_v53, 0.0  ;;  %v201_v57 = vsel %vm200_vm4, %v165_v54, 0.0 }
 0x22a   :  { %v202_v58 = vadd.f32 %v201_v57, %v199_v56  ;;  %v207_v61 = vsel %vm206_vm6, %v195_v55, 0.0 }
 0x22c   :  { %v205_v60 = vadd.f32 %v204_v59, %v202_v58 }
 0x22e   :  { %v208_v62 = vadd.f32 %v207_v61, %v205_v60 }
 0x230   :  { %209 = vst [vmem:[#allocation8] sm:$0x1] %v208_v62 }
 0x231   :  { %231 = dma.vmem_to_hbm [thread:$0]  %s227_s25, 16, %s229_s28, [#allocation9]  }
 0x232   :  { %369 = dma.done.wait [#allocation4], 64  }
 0x233   :  { %370 = vsyncadd [#allocation4], 4294967232 }
 0x234   :  { %371 = dma.done.wait [#allocation9], 16  }
 0x235   :  { %372 = vsyncadd [#allocation9], 4294967280 }
 0x236   :  { %240 = vsyncpa [#allocation3], 1 }
 0x237   :  { %241 = vsyncpa [#allocation6], 1 }
 0x238   :  { %242 = vsyncpa [#allocation4], 1 }
 0x239   :  { %243 = vsyncpa [#allocation9], 1 }

</bundles_post_ra>
